<compile_context>
chip_gen: v7x
topology: tpu7x:2x2x1
jax: 0.10.0
libtpu: 0.0.40
codegen_flags: <defaults>
</compile_context>

<pallas_src>
import jax
import jax.numpy as jnp
from jax import lax
from jax.experimental import pallas as pl
from jax.experimental.pallas import tpu as pltpu


# ---------------------------------------------------------------------------
# Path A — in-kernel gather: node table resident in VMEM, indices streamed.
# ---------------------------------------------------------------------------
def _gather_score_kernel(src_idx_ref, dst_idx_ref, emb_ref, w1a_ref, w1b_ref,
                         b1_ref, w2_ref, b2_ref, o_ref):
    # src_idx_ref / dst_idx_ref : [1, TE] int32   edge tile of endpoint ids
    # emb_ref                   : [N, F]  f32     full node table (VMEM-resident)
    # w1a_ref / w1b_ref         : [F, F]          W1^T split: src half / dst half
    # b1_ref, w2_ref            : [1, F]
    # b2_ref                    : [1, 1]  SMEM scalar
    # o_ref                     : [1, 1, TE]      lane-dense score tile
    emb = emb_ref[...]
    hs = jnp.take(emb, src_idx_ref[0, :], axis=0, mode="promise_in_bounds")
    hd = jnp.take(emb, dst_idx_ref[0, :], axis=0, mode="promise_in_bounds")
    # Split-weight form of W1(concat([hs, hd])): identical math, no concat copy.
    z = (jnp.dot(hs, w1a_ref[...], preferred_element_type=jnp.float32)
         + jnp.dot(hd, w1b_ref[...], preferred_element_type=jnp.float32)
         + b1_ref[...])
    a = jnp.maximum(z, 0.0)                                   # ReLU on the VPU
    # W2 as a lane-dense [1, TE] contraction (q.k^T pattern) -> dense writeback.
    s = lax.dot_general(w2_ref[...], a,
                        dimension_numbers=(((1,), (1,)), ((), ())),
                        preferred_element_type=jnp.float32)
    o_ref[0, :, :] = (s + b2_ref[0, 0]).astype(o_ref.dtype)


# ---------------------------------------------------------------------------
# Path B — streamed fallback: feature-major bf16 edge tiles (edges on lanes).
# ---------------------------------------------------------------------------
def _stream_score_kernel(srcT_ref, dstT_ref, w1s_ref, w1d_ref, b1c_ref,
                         w2_ref, b2_ref, o_ref):
    # srcT_ref / dstT_ref : [F, TE] bf16   feature-major gathered edge tiles
    # w1s_ref / w1d_ref   : [F, F]  bf16   W1 columns acting on src / dst halves
    # b1c_ref             : [F, 1]  f32
    # w2_ref              : [1, F]  f32
    # b2_ref              : [1, 1]  SMEM scalar
    # o_ref               : [1, 1, TE]
    zT = (jnp.dot(w1s_ref[...], srcT_ref[...], preferred_element_type=jnp.float32)
          + jnp.dot(w1d_ref[...], dstT_ref[...], preferred_element_type=jnp.float32)
          + b1c_ref[...])
    aT = jnp.maximum(zT, 0.0)                                 # lane-dense f32
    s = jnp.dot(w2_ref[...], aT, preferred_element_type=jnp.float32)   # [1, TE]
    o_ref[0, :, :] = (s + b2_ref[0, 0]).astype(o_ref.dtype)


# ---------------------------------------------------------------------------
# Wrappers.
# ---------------------------------------------------------------------------
def _pick_edge_tile(num_edges, edge_tile):
    # Lane-align the tile and cap it so the "parallel" grid axis has >= 2 steps
    # whenever the problem allows (v7x has 2 TensorCores per chip). On
    # single-TC v5e/v6e the extra grid step only costs ~0.35 us.
    edge_tile = max(128, (edge_tile // 128) * 128)
    two_step_cap = max(128, pl.cdiv(num_edges, 2 * 128) * 128)
    return min(edge_tile, two_step_cap)


def _compiler_params(per_step_vmem_bytes):
    # Default scoped VMEM is 32 MiB (v6e/v7x). Only raise the limit when the
    # actual double-buffered footprint needs it; never blanket-reserve 48 MiB
    # on v7x (64 MiB physical).
    kwargs = dict(dimension_semantics=("parallel",))
    default_scoped = 32 * 1024 * 1024
    if per_step_vmem_bytes > default_scoped - (4 << 20):
        kwargs["vmem_limit_bytes"] = int(min(per_step_vmem_bytes + (8 << 20),
                                             100 * 1024 * 1024))
    return pltpu.CompilerParams(**kwargs)


def _forward_in_kernel_gather(node_embeddings, src_idx_p, dst_idx_p, params,
                              edge_tile, num_tiles):
    num_nodes, F = node_embeddings.shape
    e_pad = num_tiles * edge_tile

    emb = node_embeddings.astype(jnp.float32)                 # tiny, stays f32
    w1 = params["w1"].astype(jnp.float32)                     # [F, 2F]
    w1a = w1[:, :F].T                                         # [F, F] (src half)
    w1b = w1[:, F:].T                                         # [F, F] (dst half)
    b1 = params["b1"].reshape(1, F).astype(jnp.float32)
    w2 = params["w2"].reshape(1, F).astype(jnp.float32)
    b2 = params["b2"].reshape(1, 1).astype(jnp.float32)
    src2d = src_idx_p.reshape(1, e_pad)
    dst2d = dst_idx_p.reshape(1, e_pad)

    per_step_vmem = (num_nodes * F * 4                 # resident node table
                     + (2 * F * F + 3 * F) * 4         # resident weights
                     + 2 * 2 * edge_tile * 4           # idx tiles (double-buffered)
                     + 2 * edge_tile * 4               # output tiles
                     + 6 * edge_tile * F * 4)          # in-kernel temporaries

    out = pl.pallas_call(
        _gather_score_kernel,
        out_shape=jax.ShapeDtypeStruct((num_tiles, 1, edge_tile), jnp.float32),
        grid_spec=pltpu.PrefetchScalarGridSpec(
            num_scalar_prefetch=0,
            grid=(num_tiles,),
            in_specs=[
                pl.BlockSpec((1, edge_tile), lambda i: (0, i)),       # src ids
                pl.BlockSpec((1, edge_tile), lambda i: (0, i)),       # dst ids
                pl.BlockSpec((num_nodes, F), lambda i: (0, 0)),       # node table
                pl.BlockSpec((F, F), lambda i: (0, 0)),               # W1a^T
                pl.BlockSpec((F, F), lambda i: (0, 0)),               # W1b^T
                pl.BlockSpec((1, F), lambda i: (0, 0)),               # b1
                pl.BlockSpec((1, F), lambda i: (0, 0)),               # W2 row
                pl.BlockSpec(memory_space=pltpu.MemorySpace.SMEM),    # b2 scalar
            ],
            out_specs=pl.BlockSpec((1, 1, edge_tile), lambda i: (i, 0, 0)),
        ),
        compiler_params=_compiler_params(per_step_vmem),
    )(src2d, dst2d, emb, w1a, w1b, b1, w2, b2)
    return out.reshape(-1)


def _forward_streamed(node_embeddings, src_idx_p, dst_idx_p, params,
                      edge_tile, num_tiles):
    num_nodes, F = node_embeddings.shape

    # Gather in XLA (fallback only), stream feature-major bf16 tiles to the
    # kernel: [F, E_pad] puts edges on the 128-lane axis (lane-dense vregs,
    # no transposes anywhere in the kernel) and bf16 halves HBM traffic.
    emb_bf = node_embeddings.astype(jnp.bfloat16)
    srcT = emb_bf[src_idx_p].T                                 # [F, E_pad] bf16
    dstT = emb_bf[dst_idx_p].T
    w1 = params["w1"]                                          # [F, 2F]
    w1s = w1[:, :F].astype(jnp.bfloat16)                       # [F, F]
    w1d = w1[:, F:].astype(jnp.bfloat16)
    b1c = params["b1"].reshape(F, 1).astype(jnp.float32)
    w2 = params["w2"].reshape(1, F).astype(jnp.float32)
    b2 = params["b2"].reshape(1, 1).astype(jnp.float32)

    per_step_vmem = (2 * 2 * F * edge_tile * 2          # streamed bf16 tiles
                     + 2 * edge_tile * 4                # output tiles
                     + (2 * F * F * 2 + 3 * F * 4)      # resident weights
                     + 3 * F * edge_tile * 4)           # in-kernel temporaries

    out = pl.pallas_call(
        _stream_score_kernel,
        out_shape=jax.ShapeDtypeStruct((num_tiles, 1, edge_tile), jnp.float32),
        grid_spec=pltpu.PrefetchScalarGridSpec(
            num_scalar_prefetch=0,
            grid=(num_tiles,),
            in_specs=[
                pl.BlockSpec((F, edge_tile), lambda i: (0, i)),       # srcT tile
                pl.BlockSpec((F, edge_tile), lambda i: (0, i)),       # dstT tile
                pl.BlockSpec((F, F), lambda i: (0, 0)),               # W1 src half
                pl.BlockSpec((F, F), lambda i: (0, 0)),               # W1 dst half
                pl.BlockSpec((F, 1), lambda i: (0, 0)),               # b1 column
                pl.BlockSpec((1, F), lambda i: (0, 0)),               # W2 row
                pl.BlockSpec(memory_space=pltpu.MemorySpace.SMEM),    # b2 scalar
            ],
            out_specs=pl.BlockSpec((1, 1, edge_tile), lambda i: (i, 0, 0)),
        ),
        compiler_params=_compiler_params(per_step_vmem),
    )(srcT, dstT, w1s, w1d, b1c, w2, b2)
    return out.reshape(-1)


def score_edges(node_embeddings, src_idx, dst_idx, params, *, edge_tile=4096,
                table_vmem_budget=4 * 1024 * 1024, prefer_in_kernel_gather=True):
    """Edge scores W2(relu(W1(concat([emb[src], emb[dst]])))) -> ([E] f32, path)."""
    num_nodes, F = node_embeddings.shape
    E = src_idx.shape[0]
    assert dst_idx.shape == (E,)

    edge_tile = _pick_edge_tile(E, edge_tile)
    num_tiles = pl.cdiv(E, edge_tile)
    e_pad = num_tiles * edge_tile

    # Pad the 4 B/edge index vectors (0 is a valid node id), never the gathered
    # [E, F] embeddings — padding those would copy the dominant HBM tensor.
    # Padded tail scores are garbage and are sliced off below.
    src_idx = src_idx.astype(jnp.int32)
    dst_idx = dst_idx.astype(jnp.int32)
    if e_pad != E:
        src_idx = jnp.pad(src_idx, (0, e_pad - E))
        dst_idx = jnp.pad(dst_idx, (0, e_pad - E))

    table_bytes = num_nodes * F * 4
    if prefer_in_kernel_gather and table_bytes <= table_vmem_budget:
        try:
            out = _forward_in_kernel_gather(node_embeddings, src_idx, dst_idx,
                                            params, edge_tile, num_tiles)
            out = jax.block_until_ready(out)
            return out[:E], "in_kernel_gather"
        except Exception:
            # In-kernel gather lowering unavailable on this jax/TPU combo (or
            # compile failed) -> use the streamed feature-major bf16 kernel.
            pass
    out = _forward_streamed(node_embeddings, src_idx, dst_idx, params,
                            edge_tile, num_tiles)
    return out[:E], "streamed_bf16"


def mlp_predictor_forward(node_embeddings, src_idx, dst_idx, params, **kwargs):
    """Drop-in forward: gather endpoints and score every edge. Returns [E] f32."""
    return score_edges(node_embeddings, src_idx, dst_idx, params, **kwargs)[0]


def init_params(key, h_feats):
    """Deterministic PyTorch-Linear-style init (uniform +/- 1/sqrt(fan_in))."""
    k1, k2, k3, k4 = jax.random.split(key, 4)
    lim1 = 1.0 / jnp.sqrt(2 * h_feats)
    w1 = jax.random.uniform(k1, (h_feats, 2 * h_feats), jnp.float32, -lim1, lim1)
    b1 = jax.random.uniform(k2, (h_feats,), jnp.float32, -lim1, lim1)
    lim2 = 1.0 / jnp.sqrt(h_feats)
    w2 = jax.random.uniform(k3, (1, h_feats), jnp.float32, -lim2, lim2)
    b2 = jax.random.uniform(k4, (1,), jnp.float32, -lim2, lim2)
    return {"w1": w1, "b1": b1, "w2": w2, "b2": b2.reshape(1, 1)}


if __name__ == "__main__":
    key = jax.random.PRNGKey(0)
    h_feats = 32
    num_nodes = 256
    num_edges = 4096            # -> edge_tile=2048, 2 parallel grid steps

    k_emb, k_src, k_dst, k_par = jax.random.split(key, 4)
    node_embeddings = jax.random.normal(k_emb, (num_nodes, h_feats), jnp.float32)
    src_idx = jax.random.randint(k_src, (num_edges,), 0, num_nodes)
    dst_idx = jax.random.randint(k_dst, (num_edges,), 0, num_nodes)
    params = init_params(k_par, h_feats)

    scores, path = score_edges(node_embeddings, src_idx, dst_idx, params)
    scores = jax.block_until_ready(scores)

    # Pure-JAX reference (the original concat formulation of the module).
    h = jnp.concatenate([node_embeddings[src_idx], node_embeddings[dst_idx]],
                        axis=1)
    ref = (jnp.maximum(h @ params["w1"].T + params["b1"], 0.0) @ params["w2"].T
           + params["b2"][0]).reshape(-1)

    tol = 2e-3 if path == "in_kernel_gather" else 5e-2   # bf16 streaming path
    assert scores.shape == (num_edges,)
    assert jnp.allclose(scores, ref, atol=tol, rtol=tol)

    print("KERNEL_OK")
</pallas_src>

<mosaic_0001>
module attributes {stable_mosaic.version = 11 : i64} {
  func.func @_stream_score_kernel(%arg0: i32, %arg1: memref<32x2048xbf16, #tpu.memory_space<vmem>>, %arg2: memref<32x2048xbf16, #tpu.memory_space<vmem>>, %arg3: memref<32x32xbf16, #tpu.memory_space<vmem>>, %arg4: memref<32x32xbf16, #tpu.memory_space<vmem>>, %arg5: memref<32x1xf32, #tpu.memory_space<vmem>>, %arg6: memref<1x32xf32, #tpu.memory_space<vmem>>, %arg7: memref<1x1xf32, #tpu.memory_space<smem>>, %arg8: memref<1x1x2048xf32, #tpu.memory_space<vmem>>) attributes {dimension_semantics = [#tpu.dimension_semantics<parallel>], iteration_bounds = array<i64: 2>, scalar_prefetch = 0 : i64, scratch_operands = 0 : i64, tpu.core_type = #tpu.core_type<tc>, window_params = [{transform_indices = @transform_0, window_bounds = array<i64: 32, 2048>}, {transform_indices = @transform_1, window_bounds = array<i64: 32, 2048>}, {pipeline_mode = #tpu.pipeline_mode<synchronous>, transform_indices = @transform_2, window_bounds = array<i64: 32, 32>}, {pipeline_mode = #tpu.pipeline_mode<synchronous>, transform_indices = @transform_3, window_bounds = array<i64: 32, 32>}, {pipeline_mode = #tpu.pipeline_mode<synchronous>, transform_indices = @transform_4, window_bounds = array<i64: 32, 1>}, {pipeline_mode = #tpu.pipeline_mode<synchronous>, transform_indices = @transform_5, window_bounds = array<i64: 1, 32>}, {transform_indices = @transform_6, window_bounds = array<i64: 1, 1>}, {transform_indices = @transform_7, window_bounds = array<i64: 1, 1, 2048>}]} {
    %c0 = arith.constant 0 : index
    %c0_0 = arith.constant 0 : index
    %0 = vector.load %arg3[%c0, %c0_0] : memref<32x32xbf16, #tpu.memory_space<vmem>>, vector<32x32xbf16>
    %c0_1 = arith.constant 0 : index
    %c0_2 = arith.constant 0 : index
    %1 = vector.load %arg1[%c0_1, %c0_2] : memref<32x2048xbf16, #tpu.memory_space<vmem>>, vector<32x2048xbf16>
    %cst = arith.constant dense<0.000000e+00> : vector<32x2048xf32>
    %2 = tpu.matmul %0, %1, %cst {dimension_numbers = #tpu.dot_dimension_numbers<[1], [0], [0], [1], [0, 0, 1, 1], [], []>} : vector<32x32xbf16>, vector<32x2048xbf16>, vector<32x2048xf32> -> vector<32x2048xf32>
    %c0_3 = arith.constant 0 : index
    %c0_4 = arith.constant 0 : index
    %3 = vector.load %arg4[%c0_3, %c0_4] : memref<32x32xbf16, #tpu.memory_space<vmem>>, vector<32x32xbf16>
    %c0_5 = arith.constant 0 : index
    %c0_6 = arith.constant 0 : index
    %4 = vector.load %arg2[%c0_5, %c0_6] : memref<32x2048xbf16, #tpu.memory_space<vmem>>, vector<32x2048xbf16>
    %cst_7 = arith.constant dense<0.000000e+00> : vector<32x2048xf32>
    %5 = tpu.matmul %3, %4, %cst_7 {dimension_numbers = #tpu.dot_dimension_numbers<[1], [0], [0], [1], [0, 0, 1, 1], [], []>} : vector<32x32xbf16>, vector<32x2048xbf16>, vector<32x2048xf32> -> vector<32x2048xf32>
    %6 = arith.addf %2, %5 : vector<32x2048xf32>
    %c0_8 = arith.constant 0 : index
    %c0_9 = arith.constant 0 : index
    %7 = vector.load %arg5[%c0_8, %c0_9] : memref<32x1xf32, #tpu.memory_space<vmem>>, vector<32x1xf32>
    %8 = vector.broadcast %7 : vector<32x1xf32> to vector<32x2048xf32>
    %9 = arith.addf %6, %8 : vector<32x2048xf32>
    %cst_10 = arith.constant 0.000000e+00 : f32
    %10 = vector.broadcast %cst_10 : f32 to vector<32x2048xf32>
    %11 = arith.maximumf %9, %10 : vector<32x2048xf32>
    %c0_11 = arith.constant 0 : index
    %c0_12 = arith.constant 0 : index
    %12 = vector.load %arg6[%c0_11, %c0_12] : memref<1x32xf32, #tpu.memory_space<vmem>>, vector<1x32xf32>
    %cst_13 = arith.constant dense<0.000000e+00> : vector<1x2048xf32>
    %13 = tpu.matmul %12, %11, %cst_13 {dimension_numbers = #tpu.dot_dimension_numbers<[1], [0], [0], [1], [0, 0, 1, 1], [], []>} : vector<1x32xf32>, vector<32x2048xf32>, vector<1x2048xf32> -> vector<1x2048xf32>
    %c0_14 = arith.constant 0 : index
    %c0_15 = arith.constant 0 : index
    %14 = memref.load %arg7[%c0_14, %c0_15] : memref<1x1xf32, #tpu.memory_space<smem>>
    %15 = vector.broadcast %14 : f32 to vector<1x2048xf32>
    %16 = arith.addf %13, %15 : vector<1x2048xf32>
    %c0_16 = arith.constant 0 : index
    %c0_17 = arith.constant 0 : index
    %c0_18 = arith.constant 0 : index
    %17 = vector.load %arg8[%c0_16, %c0_17, %c0_18] : memref<1x1x2048xf32, #tpu.memory_space<vmem>>, vector<1x1x2048xf32>
    %18 = vector.shape_cast %17 : vector<1x1x2048xf32> to vector<1x2048xf32>
    %19 = vector.shape_cast %16 : vector<1x2048xf32> to vector<1x1x2048xf32>
    tpu.vector_store %arg8[%c0_16, %c0_17, %c0_18], %19 {strides = array<i32>} : memref<1x1x2048xf32, #tpu.memory_space<vmem>>, vector<1x1x2048xf32>,
    return
  }
  func.func @transform_0(%arg0: i32) -> (i32, i32) {
    %c0_i32 = arith.constant 0 : i32
    %c0_i32_0 = arith.constant 0 : i32
    return %c0_i32, %arg0 : i32, i32
  }
  func.func @transform_1(%arg0: i32) -> (i32, i32) {
    %c0_i32 = arith.constant 0 : i32
    %c0_i32_0 = arith.constant 0 : i32
    return %c0_i32, %arg0 : i32, i32
  }
  func.func @transform_2(%arg0: i32) -> (i32, i32) {
    %c0_i32 = arith.constant 0 : i32
    %c0_i32_0 = arith.constant 0 : i32
    %c0_i32_1 = arith.constant 0 : i32
    return %c0_i32, %c0_i32_0 : i32, i32
  }
  func.func @transform_3(%arg0: i32) -> (i32, i32) {
    %c0_i32 = arith.constant 0 : i32
    %c0_i32_0 = arith.constant 0 : i32
    %c0_i32_1 = arith.constant 0 : i32
    return %c0_i32, %c0_i32_0 : i32, i32
  }
  func.func @transform_4(%arg0: i32) -> (i32, i32) {
    %c0_i32 = arith.constant 0 : i32
    %c0_i32_0 = arith.constant 0 : i32
    %c0_i32_1 = arith.constant 0 : i32
    return %c0_i32, %c0_i32_0 : i32, i32
  }
  func.func @transform_5(%arg0: i32) -> (i32, i32) {
    %c0_i32 = arith.constant 0 : i32
    %c0_i32_0 = arith.constant 0 : i32
    %c0_i32_1 = arith.constant 0 : i32
    return %c0_i32, %c0_i32_0 : i32, i32
  }
  func.func @transform_6(%arg0: i32) -> (i32, i32) {
    %c0_i32 = arith.constant 0 : i32
    %c0_i32_0 = arith.constant 0 : i32
    %c0_i32_1 = arith.constant 0 : i32
    return %c0_i32, %c0_i32_0 : i32, i32
  }
  func.func @transform_7(%arg0: i32) -> (i32, i32, i32) {
    %c0_i32 = arith.constant 0 : i32
    %c0_i32_0 = arith.constant 0 : i32
    %c0_i32_1 = arith.constant 0 : i32
    return %arg0, %c0_i32, %c0_i32_0 : i32, i32, i32
  }
}

</mosaic_0001>

<bundles_post_ra>
// kernel: tpu_custom_call.1
= control target key start
LH: loop header
LB: loop body
LE: loop exit
PB: predicated region body
PF: predicated region fallthrough
CT: control target
= control target key end

     0   :  { %s3598_s0 = inlined_call_operand.hbm [shape: bf16[32,4096], index: 0, kind: input, shape index: {}]   ;;  %s3599_s1 = inlined_call_operand.hbm [shape: bf16[32,4096], index: 1, kind: input, shape index: {}]   ;;  %s3600_s2 = inlined_call_operand.vmem [shape: bf16[32,32], index: 2, kind: input, shape index: {}]   ;;  %s3601_s3 = inlined_call_operand.vmem [shape: bf16[32,32], index: 3, kind: input, shape index: {}]   ;;  %s3602_s4 = inlined_call_operand.vmem [shape: f32[32,1], index: 4, kind: input, shape index: {}]   ;;  %s3603_s5 = inlined_call_operand.vmem [shape: f32[1,32], index: 5, kind: input, shape index: {}]   ;;  %s3604_s6 = inlined_call_operand.<no memory space> [shape: f32[1,1], index: 6, kind: input, shape index: {}]   ;;  %s3605_s7 = inlined_call_operand.hbm [shape: f32[2,1,2048], index: 7, kind: output, shape index: {}]  }
   0x1   :  { %3609 = sst [smem:[#allocation13_spill]] %s3598_s0 }
   0x2   :  { %12 = sst [smem:[#allocation2]] %s3604_s6 }
   0x3   :  { %13 = vsyncpa [#allocation4], 0 }
   0x4   :  { %15 = vsyncpa [#allocation4 + $0x1], 0 }
   0x5   :  { %16 = vsyncpa [#allocation7], 0 }
   0x6   :  { %18 = vsyncpa [#allocation7 + $0x1], 0 }
   0x7   :  { %19 = vsyncpa [#allocation5], 0 }
   0x8   :  { %21 = vsyncpa [#allocation5 + $0x1], 0  ;;  %s3070_s26 = smov 0   ;;  %s3072_s27 = smov 0  }
   0x9   :  { %s3074_s28 = smov 0   ;;  %s3076_s29 = smov 0  }
   0xa LB: > { %s3091_s6 = sadd.s32 4294967295, %s3016_s29   ;;  %s2566_s30 = sadd.s32 4294967294, %s3016_s29   ;;  %s3016_s29 = sphi %s3076_s29, %s3628_s29   ;;  %s3012_s28 = sphi %s3074_s28, %s3627_s28   ;;  %s3008_s27 = sphi %s3072_s27, %s3626_s27   ;;  %s3004_s26 = sphi %s3070_s26, %s3625_s26  }
   0xb   : > { %s3095_s8 = sadd.s32 1, %s3016_s29   ;;  %s34_s9 = sadd.s32 1, %s3012_s28 }
   0xc   : > { %s31_s10 = ssub.s32 %s3016_s29, %s3095_s8  ;;  %p41_p0 = scmp.ne.s32.totalorder %s3012_s28, %s3008_s27 }
   0xd   : > { %p32_p1 = scmp.eq.s32.totalorder %s31_s10, 0  ;;  %p42_p2 = scmp.eq.s32.totalorder %s3016_s29, 0 }
   0xe   : > { %p47_p3 = scmp.ne.s32.totalorder %s3008_s27, %s3004_s26  ;;  %p48_p4 = scmp.eq.s32.totalorder %s3091_s6, 0 }
   0xf   : > { %s3107_s11 = scalar_select %p32_p1, %s3012_s28, %s34_s9  }
  0x10   : > { %p3109_p5 = por %p42_p2, %p41_p0  ;;  %p3113_p6 = por %p48_p4, %p47_p3 }
  0x11   : > { %3610 = sst [smem:[#allocation12_spill]] %s3107_s11  ;;  %p202_p7 = scmp.eq.s32.totalorder %s3091_s6, 1 }
  0x12   : > { %s3612_s13 = scalar_select %p3113_p6, 1, 0 }
  0x13   : > { %p208_p8 = scmp.eq.s32.totalorder %s2566_s30, 1  ;;  %p2840_p10 = scmp.lt.s32.totalorder %s3016_s29, 2 }
  0x14   : > { %p3120_p11 = por %p202_p7, %p41_p0  ;;  %s3129_s16 = sand.u32 1, %s3012_s28  }
  0x15   : > { %p3124_p12 = por %p208_p8, %p47_p3  ;;  %s2692_s17 = sshll.u32 %s3016_s29, 10 }
  0x16   : > { %s3613_s14 = scalar_select %p3120_p11, 1, 0 }
  0x17   : > { %s3614_s15 = scalar_select %p3124_p12, 1, 0 }
  0x18   : > { %s2569_s18 = sshll.u32 %s3129_s16, 8  ;;  %s3615_s0 = sld [smem:[#allocation13_spill]] }
  0x19   : > { %s247_s22 = scalar_lea.vmem [#allocation3], %s2569_s18  ;;  %p3144_p13 = pnand %p2840_p10, %p3109_p5 }
  0x1a   : > { %s254_s23 = sshll.u32 %s247_s22, 4  ;;  %s244_s25 = scalar_lea.sflag [#allocation4], %s3129_s16  ;;  %s3148_s23 = int_to_ptr.vmem [resolvable:$true] %s254_s23 }
  0x1b   : > { %p2888_p2 = pneg %p3144_p13 }
  0x1e   : > { %s3138_s21 = scalar_lea.hbm %s3615_s0, %s2692_s17  ;;  %s2891_s12 = scalar_lea.hbm %s3615_s0, 8192 }
  0x1f   : > { %s2886_s30 = scalar_lea.hbm %s3138_s21, 4096  ;;  %p2892_p5 = scmp.lt.u32.totalorder %s3138_s21, %s3615_s0 }
  0x20   : > { %p2887_p1 = scmp.ne.s32.totalorder %s3138_s21, %s2886_s30  ;;  %p2893_p7 = scmp.lt.u32.totalorder %s2891_s12, %s2886_s30 }
  0x21   : > { %p2895_p10 = scmp.lt.u32.totalorder %s2886_s30, %s3138_s21 }
  0x22   : > { %p2889_p3 = pnand %p2888_p2, %p2887_p1  ;;  %p2894_p8 = por %p2893_p7, %p2892_p5 }
  0x24   : > { %p2890_p4 = pneg %p2889_p3  ;;  %p2896_p9 = por %p2895_p10, %p2894_p8 }
  0x26   : > { %p2897_p0 = pnand %p2896_p9, %p2890_p4 }
  0x28   : > { %2900 = shalt.err (!%p2897_p0)
}
  0x29   : > { %s2901_s22 = scalar_lea.vmem %s3148_s23, 4096  ;;  %s3018_s9 = smov [#allocation3]  }
  0x2a   : > { %p2902_p1 = scmp.ne.s32.totalorder %s3148_s23, %s2901_s22  ;;  %s2906_s10 = sshll.u32 %s3018_s9, 4  ;;  %s2907_s10 = int_to_ptr.vmem [resolvable:$false] %s2906_s10 }
  0x2b   : > { %s2908_s19 = scalar_lea.vmem %s2907_s10, 8192  ;;  %p2909_p11 = scmp.lt.s32.totalorder %s3148_s23, %s2907_s10 }
  0x2c   : > { %p2904_p3 = pnand %p2902_p1, %p2888_p2  ;;  %p2910_p5 = scmp.lt.s32.totalorder %s2908_s19, %s2901_s22 }
  0x2e   : > { %p2905_p12 = pneg %p2904_p3  ;;  %p2911_p7 = por %p2910_p5, %p2909_p11 }
  0x30   : > { %p2912_p8 = pnand %p2911_p7, %p2905_p12 }
  0x32   : > { %2915 = shalt.err (!%p2912_p8)
}
  0x33   : > { %s3607_s30 = smov 2048   ;;  %s3020_s12 = smov 1024  }
  0x34   : > { %s3021_s20 = smov 64   ;;  %p283_p9 = scmp.lt.s32.totalorder %s3016_s29, 3 }
  0x35   : > { %2832 = dma.hbm_to_vmem [thread:$0]  (!%p3144_p13), %s3138_s21, 4096, %s3148_s23, %s244_s25, %s3607_s30, %s3020_s12, %s3021_s20  }
  0x36   : > { %s3188_s10 = scalar_lea.hbm %s3599_s1, %s2692_s17  ;;  %p3617_p11 = scmp.ge.s32.totalorder %s3016_s29, 1 }
  0x37   : > { %s268_s0 = scalar_lea.vmem [#allocation6], %s2569_s18  ;;  %s265_s21 = scalar_lea.sflag [#allocation7], %s3129_s16 }
  0x38   : > { %p3192_p12 = pnand %p3617_p11, %p283_p9  ;;  %s275_s11 = sshll.u32 %s268_s0, 4  ;;  %s3198_s11 = int_to_ptr.vmem [resolvable:$true] %s275_s11 }
  0x39   : > { %s2916_s23 = scalar_lea.hbm %s3188_s10, 4096  ;;  %s2921_s22 = scalar_lea.hbm %s3599_s1, 8192 }
  0x3a   : > { %p2917_p0 = scmp.ne.s32.totalorder %s3188_s10, %s2916_s23  ;;  %p2922_p1 = scmp.lt.u32.totalorder %s3188_s10, %s3599_s1 }
  0x3b   : > { %p2923_p3 = scmp.lt.u32.totalorder %s2921_s22, %s2916_s23  ;;  %p2925_p7 = scmp.lt.u32.totalorder %s2916_s23, %s3188_s10 }
  0x3c   : > { %p2919_p4 = pnand %p2917_p0, %p2888_p2 }
  0x3d   : > { %p2924_p5 = por %p2923_p3, %p2922_p1 }
  0x3e   : > { %p2920_p10 = pneg %p2919_p4 }
  0x3f   : > { %p2926_p8 = por %p2925_p7, %p2924_p5 }
  0x41   : > { %p2927_p9 = pnand %p2926_p8, %p2920_p10 }
  0x43   : > { %2930 = shalt.err (!%p2927_p9)
}
  0x44   : > { %s2931_s0 = scalar_lea.vmem %s3198_s11, 4096  ;;  %s3022_s18 = smov [#allocation6]  }
  0x45   : > { %p2932_p11 = scmp.ne.s32.totalorder %s3198_s11, %s2931_s0  ;;  %s2936_s17 = sshll.u32 %s3022_s18, 4  ;;  %s2937_s17 = int_to_ptr.vmem [resolvable:$false] %s2936_s17 }
  0x46   : > { %s2938_s30 = scalar_lea.vmem %s2937_s17, 8192  ;;  %p2939_p6 = scmp.lt.s32.totalorder %s3198_s11, %s2937_s17 }
  0x47   : > { %p2934_p0 = pnand %p2932_p11, %p2888_p2  ;;  %p2940_p1 = scmp.lt.s32.totalorder %s2938_s30, %s2931_s0 }
  0x49   : > { %p2935_p4 = pneg %p2934_p0  ;;  %p2941_p3 = por %p2940_p1, %p2939_p6 }
  0x4b   : > { %p2942_p5 = pnand %p2941_p3, %p2935_p4 }
  0x4d   : > { %2945 = shalt.err (!%p2942_p5)
}
  0x4e   : > { %s3619_s23 = smov 2048   ;;  %287 = sbr.rel (%p3192_p12) target bundleno = 684 (0x2ac), region = 48 }
  0x4f   : > { %2835 = dma.hbm_to_vmem [thread:$0]  (!%p3144_p13), %s3188_s10, 4096, %s3198_s11, %s265_s21, %s3619_s23, %s3020_s12, %s3021_s20  }
  0x50   : > { %s3232_s25 = sand.u32 (!%p3192_p12), 1, %s3008_s27   ;;  %p3620_p6 = scmp.ne.s32.totalorder (!%p3192_p12), %s3612_s13, 0 }
  0x51   : > { %s2576_s22 = sshll.u32 (!%p3192_p12), %s3232_s25, 8  ;;  %s290_s9 = scalar_lea.sflag (!%p3192_p12), [#allocation4], %s3232_s25 }
  0x52   : > { %s3236_s24 = scalar_lea.vmem (!%p3192_p12), [#allocation3], %s2576_s22 }
  0x55   : > { %2991 = dma.done.wait (%p3620_p6), %s290_s9, 4096  }
  0x56   : > { %2993 = vsyncadd (%p3620_p6), %s290_s9, 4294963200  ;;  %s299_s11 = scalar_lea.sflag [#allocation7], %s3232_s25  ;;  %s3243_s16 = scalar_lea.vmem [#allocation6], %s2576_s22 }
  0x57   : > { %2995 = dma.done.wait (%p3620_p6), %s299_s11, 4096  }
  0x58   : > { %2997 = vsyncadd (%p3620_p6), %s299_s11, 4294963200  ;;  %v3023_v0 = vmov 0   ;;  %v381_v1 = vld [vmem:[%s3243_s16] sm:$0xff]  ;;  %v382_v3 = vld [vmem:[%s3243_s16 + $0x8] sm:$0xff]  ;;  %vm583_vm0 = vcmask 261120   ;;  %s1767_s20 = sld [smem:[#allocation2]] }
  0x59   : > { %622 = vmatprep.mubr.bf16.mxu0 %v3023_v0  ;;  %675 = vmatprep.mubr.bf16.mxu1 %v3023_v0  ;;  %v389_v2 = vld [vmem:[%s3243_s16 + $0x40] sm:$0xff]  ;;  %v390_v5 = vld [vmem:[%s3243_s16 + $0x48] sm:$0xff]  ;;  %v383_v15 = vld [vmem:[%s3243_s16 + $0x10] sm:$0xff]  ;;  %s2578_s10 = sshll.u32 %s3232_s25, 4  ;;  %s2694_s21 = sshll.u32 %s3091_s6, 8 }
  0x5a   : > { %2880 = vset.pattern.permute.xlu0 %v3023_v0  ;;  %2881 = vset.pattern.permute.xlu1 %v3023_v0  ;;  %v2582_v4 = vcombine.high %v381_v1, %v389_v2  ;;  %v2581_v6 = vcombine.low %v381_v1, %v389_v2  ;;  %v397_v7 = vld [vmem:[%s3243_s16 + $0x80] sm:$0xff]  ;;  %v2584_v9 = vcombine.high %v382_v3, %v390_v5  ;;  %v398_v12 = vld [vmem:[%s3243_s16 + $0x88] sm:$0xff]  ;;  %v391_v17 = vld [vmem:[%s3243_s16 + $0x50] sm:$0xff]  ;;  %s3545_s19 = scalar_lea.vmem [#allocation8], %s2578_s10  ;;  %s3553_s30 = scalar_lea.hbm %s3605_s7, %s2694_s21 }
  0x5b   : > { %v405_v8 = vld [vmem:[%s3243_s16 + $0xc0] sm:$0xff]  ;;  %v2583_v10 = vcombine.low %v382_v3, %v390_v5  ;;  %v406_v13 = vld [vmem:[%s3243_s16 + $0xc8] sm:$0xff]  ;;  %v384_v18 = vld [vmem:[%s3243_s16 + $0x18] sm:$0xff]  ;;  %v2586_v21 = vcombine.high %v383_v15, %v391_v17  ;;  %v2585_v26 = vcombine.low %v383_v15, %v391_v17  ;;  %s2473_s0 = sshll.u32 %s3545_s19, 4  ;;  %s2459_s23 = scalar_lea.sflag [#allocation5], %s3232_s25  ;;  %s3555_s0 = int_to_ptr.vmem [resolvable:$true] %s2473_s0 }
  0x5c   : > { %v2598_v11 = vcombine.high %v397_v7, %v405_v8  ;;  %590 = vmatprep.subr.bf16.mxu0 %v2582_v4  ;;  %v2600_v14 = vcombine.high %v398_v12, %v406_v13  ;;  %643 = vmatprep.subr.bf16.mxu1 %v2584_v9  ;;  %v2597_v16 = vcombine.low %v397_v7, %v405_v8  ;;  %v392_v19 = vld [vmem:[%s3243_s16 + $0x58] sm:$0xff]  ;;  %v3268_v23 = vld [vmem:[%s3601_s3] sm:$0xff]   ;;  %v399_v24 = vld [vmem:[%s3243_s16 + $0x90] sm:$0xff]  ;;  %s2946_s22 = scalar_lea.vmem %s3555_s0, 256  ;;  %p3621_p2 = scmp.ne.s32.totalorder %s3613_s14, 0 }
  0x5d   : > { %591 = vmatpush1.bf16.msra.mxu0 %v2581_v6  ;;  %644 = vmatpush1.bf16.msra.mxu1 %v2583_v10  ;;  %v2599_v20 = vcombine.low %v398_v12, %v406_v13  ;;  %v2588_v22 = vcombine.high %v384_v18, %v392_v19  ;;  %v407_v25 = vld [vmem:[%s3243_s16 + $0xd0] sm:$0xff]  ;;  %v400_v27 = vld [vmem:[%s3243_s16 + $0x98] sm:$0xff]  ;;  %v2587_v29 = vcombine.low %v384_v18, %v392_v19  ;;  %v385_v31 = vld [vmem:[%s3243_s16 + $0x20] sm:$0xff]  ;;  %p2947_p13 = scmp.ne.s32.totalorder %s3555_s0, %s2946_s22  ;;  %s3026_s6 = smov [#allocation8]  }
  0x5e   : > { %592 = vmatprep.subr.bf16.mxu0 %v2598_v11  ;;  %645 = vmatprep.subr.bf16.mxu1 %v2600_v14  ;;  %v408_v28 = vld [vmem:[%s3243_s16 + $0xd8] sm:$0xff]  ;;  %v2602_v30 = vcombine.high %v399_v24, %v407_v25  ;;  %v393_v32 = vld [vmem:[%s3243_s16 + $0x60] sm:$0xff]  ;;  %v386_v34 = vld [vmem:[%s3243_s16 + $0x28] sm:$0xff]  ;;  %v2601_v36 = vcombine.low %v399_v24, %v407_v25  ;;  %s2950_s9 = sshll.u32 %s3026_s6, 4  ;;  %s2951_s9 = int_to_ptr.vmem [resolvable:$false] %s2950_s9 }
  0x5f   : > { %v2604_v33 = vcombine.high %v400_v27, %v408_v28  ;;  %v394_v35 = vld [vmem:[%s3243_s16 + $0x68] sm:$0xff]  ;;  %v2603_v37 = vcombine.low %v400_v27, %v408_v28  ;;  %v2590_v38 = vcombine.high %v385_v31, %v393_v32  ;;  %v401_v41 = vld [vmem:[%s3243_s16 + $0xa0] sm:$0xff]  ;;  %v2589_v43 = vcombine.low %v385_v31, %v393_v32  ;;  %v387_v49 = vld [vmem:[%s3243_s16 + $0x30] sm:$0xff]  ;;  %p2948_p12 = pnand %p2947_p13, %p3621_p2  ;;  %s2952_s11 = scalar_lea.vmem %s2951_s9, 512 }
  0x60   : > { %v2592_v39 = vcombine.high %v386_v34, %v394_v35  ;;  %v3287_v40 = vld [vmem:[%s3601_s3 + $0x8] sm:$0xff]   ;;  %v409_v42 = vld [vmem:[%s3243_s16 + $0xe0] sm:$0xff]  ;;  %v2591_v46 = vcombine.low %v386_v34, %v394_v35  ;;  %v395_v50 = vld [vmem:[%s3243_s16 + $0x70] sm:$0xff]  ;;  %p2953_p7 = scmp.lt.s32.totalorder %s3555_s0, %s2951_s9  ;;  %p2954_p8 = scmp.lt.s32.totalorder %s2952_s11, %s2946_s22 }
  0x61   : > { %593 = vmatpush1.bf16.msra.mxu0 %v2597_v16  ;;  %646 = vmatpush1.bf16.msra.mxu1 %v2599_v20  ;;  %v402_v44 = vld [vmem:[%s3243_s16 + $0xa8] sm:$0xff]  ;;  %v1614_v47 = vld [vmem:[%s3602_s4] sm:$0xff]  ;;  %v2606_v48 = vcombine.high %v401_v41, %v409_v42  ;;  %v1616_v51 = vld [vmem:[%s3602_s4 + $0x10] sm:$0xff]  ;;  %v2605_v55 = vcombine.low %v401_v41, %v409_v42  ;;  %v2594_v58 = vcombine.high %v387_v49, %v395_v50  ;;  %p2949_p10 = pneg %p2948_p12 }
  0x62   : > { %696 = vmatprep.subr.bf16.mxu0 %v2586_v21  ;;  %749 = vmatprep.subr.bf16.mxu1 %v2588_v22  ;;  %v410_v45 = vld [vmem:[%s3243_s16 + $0xe8] sm:$0xff]  ;;  %v388_v53 = vld [vmem:[%s3243_s16 + $0x38] sm:$0xff]  ;;  %v403_v61 = vld [vmem:[%s3243_s16 + $0xb0] sm:$0xff]  ;;  %v2593_v63 = vcombine.low %v387_v49, %v395_v50  ;;  %p2955_p9 = por %p2954_p8, %p2953_p7 }
  0x63   : > { %1620 = vperm.xlu0 %2880, %v1614_v47   ;;  %v2608_v52 = vcombine.high %v402_v44, %v410_v45  ;;  %v396_v54 = vld [vmem:[%s3243_s16 + $0x78] sm:$0xff]  ;;  %1630 = vperm.xlu1 %2881, %v1616_v51   ;;  %v1615_v56 = vld [vmem:[%s3602_s4 + $0x8] sm:$0xff]  ;;  %v2607_v57 = vcombine.low %v402_v44, %v410_v45  ;;  %v411_v62 = vld [vmem:[%s3243_s16 + $0xf0] sm:$0xff] }
  0x64   : > { %2613 = vmatmul.mubr.msk.bf16.vlgmr.msra.gmra.mrb[0].mxu0 %vm583_vm0, %v3268_v23  ;;  %2615 = vmatmul.mubr.msk.bf16.vlgmr.msra.gmra.mrb[0].mxu1 %vm583_vm0, %v3268_v23  ;;  %v1617_v59 = vld [vmem:[%s3602_s4 + $0x18] sm:$0xff]  ;;  %v2596_v60 = vcombine.high %v388_v53, %v396_v54  ;;  %v2595_v3 = vcombine.low %v388_v53, %v396_v54  ;;  %v2610_v4 = vcombine.high %v403_v61, %v411_v62  ;;  %v345_v5 = vld [vmem:[%s3236_s24] sm:$0xff]  ;;  %v346_v8 = vld [vmem:[%s3236_s24 + $0x8] sm:$0xff]  ;;  %p2956_p11 = pnand %p2955_p9, %p2949_p10 }
  0x65   : > { %697 = vmatpush1.bf16.msra.mxu0 %v2585_v26  ;;  %750 = vmatpush1.bf16.msra.mxu1 %v2587_v29  ;;  %v404_v1 = vld [vmem:[%s3243_s16 + $0xb8] sm:$0xff]  ;;  %v353_v6 = vld [vmem:[%s3236_s24 + $0x40] sm:$0xff]  ;;  %v354_v9 = vld [vmem:[%s3236_s24 + $0x48] sm:$0xff]  ;;  %v2609_v10 = vcombine.low %v403_v61, %v411_v62 }
  0x66   : > { %632 = vmatprep.mubr.bf16.mxu0 %v3023_v0  ;;  %685 = vmatprep.mubr.bf16.mxu1 %v3023_v0  ;;  %v412_v2 = vld [vmem:[%s3243_s16 + $0xf8] sm:$0xff]  ;;  %v2632_v12 = vcombine.high %v345_v5, %v353_v6  ;;  %v2634_v13 = vcombine.high %v346_v8, %v354_v9  ;;  %v361_v14 = vld [vmem:[%s3236_s24 + $0x80] sm:$0xff]  ;;  %v2631_v16 = vcombine.low %v345_v5, %v353_v6  ;;  %v362_v17 = vld [vmem:[%s3236_s24 + $0x88] sm:$0xff] }
  0x67   : > { %698 = vmatprep.subr.bf16.mxu0 %v2602_v30  ;;  %751 = vmatprep.subr.bf16.mxu1 %v2604_v33  ;;  %v2612_v7 = vcombine.high %v404_v1, %v412_v2  ;;  %v2611_v11 = vcombine.low %v404_v1, %v412_v2  ;;  %v369_v15 = vld [vmem:[%s3236_s24 + $0xc0] sm:$0xff]  ;;  %v370_v18 = vld [vmem:[%s3236_s24 + $0xc8] sm:$0xff]  ;;  %v2633_v19 = vcombine.low %v346_v8, %v354_v9  ;;  %v347_v21 = vld [vmem:[%s3236_s24 + $0x10] sm:$0xff] }
  0x68   : > { %1625 = vperm.xlu0 %2880, %v1615_v56   ;;  %1635 = vperm.xlu1 %2881, %v1617_v59   ;;  %v2648_v20 = vcombine.high %v361_v14, %v369_v15  ;;  %v355_v22 = vld [vmem:[%s3236_s24 + $0x50] sm:$0xff]  ;;  %v2650_v24 = vcombine.high %v362_v17, %v370_v18  ;;  %v348_v25 = vld [vmem:[%s3236_s24 + $0x18] sm:$0xff]  ;;  %v2647_v27 = vcombine.low %v361_v14, %v369_v15  ;;  %v350_v41 = vld [vmem:[%s3236_s24 + $0x28] sm:$0xff] }
  0x69   : > { %699 = vmatpush1.bf16.msra.mxu0 %v2601_v36  ;;  %752 = vmatpush1.bf16.msra.mxu1 %v2603_v37  ;;  %v356_v26 = vld [vmem:[%s3236_s24 + $0x58] sm:$0xff]  ;;  %v2649_v28 = vcombine.low %v362_v17, %v370_v18  ;;  %v2636_v29 = vcombine.high %v347_v21, %v355_v22  ;;  %v363_v31 = vld [vmem:[%s3236_s24 + $0x90] sm:$0xff]  ;;  %v2635_v33 = vcombine.low %v347_v21, %v355_v22  ;;  %v358_v42 = vld [vmem:[%s3236_s24 + $0x68] sm:$0xff] }
  0x6a   : > { %802 = vmatprep.subr.bf16.mxu0 %v2590_v38  ;;  %855 = vmatprep.subr.bf16.mxu1 %v2592_v39  ;;  %v2638_v30 = vcombine.high %v348_v25, %v356_v26  ;;  %v371_v32 = vld [vmem:[%s3236_s24 + $0xd0] sm:$0xff]  ;;  %v364_v34 = vld [vmem:[%s3236_s24 + $0x98] sm:$0xff]  ;;  %v2637_v36 = vcombine.low %v348_v25, %v356_v26  ;;  %v349_v38 = vld [vmem:[%s3236_s24 + $0x20] sm:$0xff]  ;;  %v2641_v53 = vcombine.low %v350_v41, %v358_v42 }
  0x6b   : > { %v372_v35 = vld [vmem:[%s3236_s24 + $0xd8] sm:$0xff]  ;;  %v2652_v37 = vcombine.high %v363_v31, %v371_v32  ;;  %v357_v39 = vld [vmem:[%s3236_s24 + $0x60] sm:$0xff]  ;;  %v3389_v47 = vld [vmem:[%s3600_s2 + $0x8] sm:$0xff]  }
  0x6c   : > { %2614 = vmatmul.mubr.msk.bf16.gmra.mrb[4].mxu0 %vm583_vm0, %v3287_v40  ;;  %2616 = vmatmul.mubr.msk.bf16.gmra.mrb[4].mxu1 %vm583_vm0, %v3287_v40  ;;  %v2653_v44 = vcombine.low %v364_v34, %v372_v35  ;;  %v2640_v45 = vcombine.high %v349_v38, %v357_v39  ;;  %v373_v49 = vld [vmem:[%s3236_s24 + $0xe0] sm:$0xff]  ;;  %v2639_v50 = vcombine.low %v349_v38, %v357_v39  ;;  %v366_v51 = vld [vmem:[%s3236_s24 + $0xa8] sm:$0xff]  ;;  %v359_v56 = vld [vmem:[%s3236_s24 + $0x70] sm:$0xff] }
  0x6d   : > { %728 = vmatprep.mubr.bf16.mxu0 %v3023_v0  ;;  %781 = vmatprep.mubr.bf16.mxu1 %v3023_v0  ;;  %v360_v59 = vld [vmem:[%s3236_s24 + $0x78] sm:$0xff]  ;;  %v367_v1 = vld [vmem:[%s3236_s24 + $0xb0] sm:$0xff] }
  0x6e   : > { %v375_v2 = vld [vmem:[%s3236_s24 + $0xf0] sm:$0xff]  ;;  %v376_v5 = vld [vmem:[%s3236_s24 + $0xf8] sm:$0xff] }
  0x6f   : > { %v2659_v9 = vcombine.low %v367_v1, %v375_v2 }
  0x74   : > { %2617 = vmatmul.mubr.msk.bf16.vlgmr.msra.gmra.mrb[8].mxu0 %vm583_vm0, %v3268_v23  ;;  %2619 = vmatmul.mubr.msk.bf16.vlgmr.msra.gmra.mrb[8].mxu1 %vm583_vm0, %v3268_v23 }
  0x75   : > { %803 = vmatpush1.bf16.msra.mxu0 %v2589_v43  ;;  %856 = vmatpush1.bf16.msra.mxu1 %v2591_v46  ;;  %v2651_v43 = vcombine.low %v363_v31, %v371_v32  ;;  %v2642_v46 = vcombine.high %v350_v41, %v358_v42 }
  0x76   : > { %738 = vmatprep.mubr.bf16.mxu0 %v3023_v0  ;;  %791 = vmatprep.mubr.bf16.mxu1 %v3023_v0 }
  0x77   : > { %804 = vmatprep.subr.bf16.mxu0 %v2606_v48  ;;  %857 = vmatprep.subr.bf16.mxu1 %v2608_v52  ;;  %v365_v48 = vld [vmem:[%s3236_s24 + $0xa0] sm:$0xff]  ;;  %v374_v52 = vld [vmem:[%s3236_s24 + $0xe8] sm:$0xff] }
  0x78   : > { %v2656_v54 = vcombine.high %v365_v48, %v373_v49  ;;  %v2657_v61 = vcombine.low %v366_v51, %v374_v52 }
  0x79   : > { %805 = vmatpush1.bf16.msra.mxu0 %v2605_v55  ;;  %858 = vmatpush1.bf16.msra.mxu1 %v2607_v57  ;;  %v351_v55 = vld [vmem:[%s3236_s24 + $0x30] sm:$0xff]  ;;  %v2658_v57 = vcombine.high %v366_v51, %v374_v52 }
  0x7a   : > { %908 = vmatprep.subr.bf16.mxu0 %v2594_v58  ;;  %961 = vmatprep.subr.bf16.mxu1 %v2596_v60  ;;  %v352_v58 = vld [vmem:[%s3236_s24 + $0x38] sm:$0xff]  ;;  %v2655_v60 = vcombine.low %v365_v48, %v373_v49  ;;  %v2644_v62 = vcombine.high %v351_v55, %v359_v56 }
  0x7b   : > { %v2645_v6 = vcombine.low %v352_v58, %v360_v59 }
  0x7c   : > { %2618 = vmatmul.mubr.msk.bf16.gmra.mrb[12].mxu0 %vm583_vm0, %v3287_v40  ;;  %2620 = vmatmul.mubr.msk.bf16.gmra.mrb[12].mxu1 %vm583_vm0, %v3287_v40 }
  0x7d   : > { %834 = vmatprep.mubr.bf16.mxu0 %v3023_v0  ;;  %887 = vmatprep.mubr.bf16.mxu1 %v3023_v0 }
  0x84   : > { %2621 = vmatmul.mubr.msk.bf16.vlgmr.msra.gmra.mrb[16].mxu0 %vm583_vm0, %v3268_v23  ;;  %2623 = vmatmul.mubr.msk.bf16.vlgmr.msra.gmra.mrb[16].mxu1 %vm583_vm0, %v3268_v23 }
  0x85   : > { %909 = vmatpush1.bf16.msra.mxu0 %v2593_v63  ;;  %962 = vmatpush1.bf16.msra.mxu1 %v2595_v3  ;;  %v2646_v63 = vcombine.high %v352_v58, %v360_v59  ;;  %v2643_v3 = vcombine.low %v351_v55, %v359_v56 }
  0x86   : > { %844 = vmatprep.mubr.bf16.mxu0 %v3023_v0  ;;  %897 = vmatprep.mubr.bf16.mxu1 %v3023_v0 }
  0x87   : > { %910 = vmatprep.subr.bf16.mxu0 %v2610_v4  ;;  %963 = vmatprep.subr.bf16.mxu1 %v2612_v7  ;;  %v368_v4 = vld [vmem:[%s3236_s24 + $0xb8] sm:$0xff]  ;;  %v2660_v7 = vcombine.high %v367_v1, %v375_v2 }
  0x88   : > { %v2662_v8 = vcombine.high %v368_v4, %v376_v5 }
  0x89   : > { %911 = vmatpush1.bf16.msra.mxu0 %v2609_v10  ;;  %964 = vmatpush1.bf16.msra.mxu1 %v2611_v11  ;;  %v2661_v10 = vcombine.low %v368_v4, %v376_v5  ;;  %v3024_v11 = vmov 0.0  }
  0x8a   : > { %1190 = vmatprep.subr.bf16.mxu0 %v2632_v12  ;;  %1243 = vmatprep.subr.bf16.mxu1 %v2634_v13 }
  0x8c   : > { %2622 = vmatmul.mubr.msk.bf16.gmra.mrb[20].mxu0 %vm583_vm0, %v3287_v40  ;;  %2624 = vmatmul.mubr.msk.bf16.gmra.mrb[20].mxu1 %vm583_vm0, %v3287_v40 }
  0x8d   : > { %940 = vmatprep.mubr.bf16.mxu0 %v3023_v0  ;;  %993 = vmatprep.mubr.bf16.mxu1 %v3023_v0 }
  0x94   : > { %2625 = vmatmul.mubr.msk.bf16.vlgmr.msra.gmra.mrb[24].mxu0 %vm583_vm0, %v3268_v23  ;;  %2627 = vmatmul.mubr.msk.bf16.vlgmr.msra.gmra.mrb[24].mxu1 %vm583_vm0, %v3268_v23  ;;  %v3370_v23 = vld [vmem:[%s3600_s2] sm:$0xff]  }
  0x95   : > { %1191 = vmatpush1.bf16.msra.mxu0 %v2631_v16  ;;  %1244 = vmatpush1.bf16.msra.mxu1 %v2633_v19 }
  0x96   : > { %950 = vmatprep.mubr.bf16.mxu0 %v3023_v0  ;;  %1003 = vmatprep.mubr.bf16.mxu1 %v3023_v0 }
  0x97   : > { %1192 = vmatprep.subr.bf16.mxu0 %v2648_v20  ;;  %1245 = vmatprep.subr.bf16.mxu1 %v2650_v24 }
  0x99   : > { %1193 = vmatpush1.bf16.msra.mxu0 %v2647_v27  ;;  %1246 = vmatpush1.bf16.msra.mxu1 %v2649_v28 }
  0x9a   : > { %1296 = vmatprep.subr.bf16.mxu0 %v2636_v29  ;;  %1349 = vmatprep.subr.bf16.mxu1 %v2638_v30 }
  0x9c   : > { %2626 = vmatmul.mubr.msk.bf16.gmra.mrb[28].mxu0 %vm583_vm0, %v3287_v40  ;;  %2628 = vmatmul.mubr.msk.bf16.gmra.mrb[28].mxu1 %vm583_vm0, %v3287_v40  ;;  %v2654_v40 = vcombine.high %v364_v34, %v372_v35 }
  0x9d   : > { %1222 = vmatprep.mubr.bf16.mxu0 %v3023_v0  ;;  %1275 = vmatprep.mubr.bf16.mxu1 %v3023_v0 }
  0xa4   : > { %2663 = vmatmul.mubr.msk.bf16.vlgmr.msra.gmra.mrb[0].mxu0 %vm583_vm0, %v3370_v23  ;;  %2665 = vmatmul.mubr.msk.bf16.vlgmr.msra.gmra.mrb[0].mxu1 %vm583_vm0, %v3370_v23 }
  0xa5   : > { %1297 = vmatpush1.bf16.msra.mxu0 %v2635_v33  ;;  %1350 = vmatpush1.bf16.msra.mxu1 %v2637_v36 }
  0xa6   : > { %1232 = vmatprep.mubr.bf16.mxu0 %v3023_v0  ;;  %1285 = vmatprep.mubr.bf16.mxu1 %v3023_v0 }
  0xa7   : > { %1298 = vmatprep.subr.bf16.mxu0 %v2652_v37  ;;  %1351 = vmatprep.subr.bf16.mxu1 %v2654_v40 }
  0xa9   : > { %1299 = vmatpush1.bf16.msra.mxu0 %v2651_v43  ;;  %1352 = vmatpush1.bf16.msra.mxu1 %v2653_v44 }
  0xaa   : > { %1402 = vmatprep.subr.bf16.mxu0 %v2640_v45  ;;  %1455 = vmatprep.subr.bf16.mxu1 %v2642_v46 }
  0xac   : > { %2664 = vmatmul.mubr.msk.bf16.gmra.mrb[4].mxu0 %vm583_vm0, %v3389_v47  ;;  %2666 = vmatmul.mubr.msk.bf16.gmra.mrb[4].mxu1 %vm583_vm0, %v3389_v47 }
  0xad   : > { %1328 = vmatprep.mubr.bf16.mxu0 %v3023_v0  ;;  %1381 = vmatprep.mubr.bf16.mxu1 %v3023_v0 }
  0xb4   : > { %2667 = vmatmul.mubr.msk.bf16.vlgmr.msra.gmra.mrb[8].mxu0 %vm583_vm0, %v3370_v23  ;;  %2669 = vmatmul.mubr.msk.bf16.vlgmr.msra.gmra.mrb[8].mxu1 %vm583_vm0, %v3370_v23 }
  0xb5   : > { %1403 = vmatpush1.bf16.msra.mxu0 %v2639_v50  ;;  %1456 = vmatpush1.bf16.msra.mxu1 %v2641_v53 }
  0xb6   : > { %1338 = vmatprep.mubr.bf16.mxu0 %v3023_v0  ;;  %1391 = vmatprep.mubr.bf16.mxu1 %v3023_v0 }
  0xb7   : > { %1404 = vmatprep.subr.bf16.mxu0 %v2656_v54  ;;  %1457 = vmatprep.subr.bf16.mxu1 %v2658_v57 }
  0xb9   : > { %1405 = vmatpush1.bf16.msra.mxu0 %v2655_v60  ;;  %1458 = vmatpush1.bf16.msra.mxu1 %v2657_v61 }
  0xba   : > { %1508 = vmatprep.subr.bf16.mxu0 %v2644_v62  ;;  %1561 = vmatprep.subr.bf16.mxu1 %v2646_v63 }
  0xbc   : > { %2668 = vmatmul.mubr.msk.bf16.gmra.mrb[12].mxu0 %vm583_vm0, %v3389_v47  ;;  %2670 = vmatmul.mubr.msk.bf16.gmra.mrb[12].mxu1 %vm583_vm0, %v3389_v47 }
  0xbd   : > { %1434 = vmatprep.mubr.bf16.mxu0 %v3023_v0  ;;  %1487 = vmatprep.mubr.bf16.mxu1 %v3023_v0 }
  0xc4   : > { %2671 = vmatmul.mubr.msk.bf16.vlgmr.msra.gmra.mrb[16].mxu0 %vm583_vm0, %v3370_v23  ;;  %2673 = vmatmul.mubr.msk.bf16.vlgmr.msra.gmra.mrb[16].mxu1 %vm583_vm0, %v3370_v23 }
  0xc5   : > { %1509 = vmatpush1.bf16.msra.mxu0 %v2643_v3  ;;  %1562 = vmatpush1.bf16.msra.mxu1 %v2645_v6 }
  0xc6   : > { %1444 = vmatprep.mubr.bf16.mxu0 %v3023_v0  ;;  %1497 = vmatprep.mubr.bf16.mxu1 %v3023_v0 }
  0xc7   : > { %1510 = vmatprep.subr.bf16.mxu0 %v2660_v7  ;;  %1563 = vmatprep.subr.bf16.mxu1 %v2662_v8 }
  0xc9   : > { %1511 = vmatpush1.bf16.msra.mxu0 %v2659_v9  ;;  %1564 = vmatpush1.bf16.msra.mxu1 %v2661_v10 }
  0xcc   : > { %2672 = vmatmul.mubr.msk.bf16.gmra.mrb[20].mxu0 %vm583_vm0, %v3389_v47  ;;  %2674 = vmatmul.mubr.msk.bf16.gmra.mrb[20].mxu1 %vm583_vm0, %v3389_v47 }
  0xcd   : > { %1540 = vmatprep.mubr.bf16.mxu0 %v3023_v0  ;;  %1593 = vmatprep.mubr.bf16.mxu1 %v3023_v0 }
  0xd4   : > { %2675 = vmatmul.mubr.msk.bf16.vlgmr.msra.gmra.mrb[24].mxu0 %vm583_vm0, %v3370_v23  ;;  %2677 = vmatmul.mubr.msk.bf16.vlgmr.msra.gmra.mrb[24].mxu1 %vm583_vm0, %v3370_v23 }
  0xd5   : > { %1550 = vmatprep.mubr.bf16.mxu0 %v3023_v0  ;;  %1603 = vmatprep.mubr.bf16.mxu1 %v3023_v0 }
  0xdc   : > { %2676 = vmatmul.mubr.msk.bf16.gmra.mrb[28].mxu0 %vm583_vm0, %v3389_v47  ;;  %2678 = vmatmul.mubr.msk.bf16.gmra.mrb[28].mxu1 %vm583_vm0, %v3389_v47 }
  0xdd   : > { %1836 = vmatprep.mubr.f32.mxu0 %v3024_v11  ;;  %1907 = vmatprep.mubr.f32.mxu1 %v3024_v11 }
  0xe2   : > { %v3445_v12 = vpop.permute.xlu0 %1620  ;;  %v3449_v15 = vpop.permute.xlu1 %1630 }
  0xe7   : > { %v3447_v13 = vpop.permute.xlu0 %1625  ;;  %v3459_v42 = vpop.permute.xlu1 %1635 }
 0x177   : > { %v1224_v14 = vpop.f32.mrb[0].mxu0  ;;  %v1277_v16 = vpop.f32.mrb[0].mxu1 }
 0x178   : > { %v1638_v0 = vadd.f32 %v3445_v12, %v1224_v14  ;;  %v1226_v17 = vpop.f32.mrb[1].mxu0  ;;  %v1640_v18 = vadd.f32 %v3445_v12, %v1277_v16  ;;  %v1279_v20 = vpop.f32.mrb[1].mxu1 }
 0x179   : > { %v1639_v19 = vadd.f32 %v3445_v12, %v1226_v17  ;;  %v1228_v21 = vpop.f32.mrb[2].mxu0  ;;  %v1641_v22 = vadd.f32 %v3445_v12, %v1279_v20  ;;  %v1281_v25 = vpop.f32.mrb[2].mxu1 }
 0x17a   : > { %v1654_v24 = vadd.f32 %v3447_v13, %v1228_v21  ;;  %v1230_v26 = vpop.f32.mrb[3].mxu0  ;;  %v1656_v27 = vadd.f32 %v3447_v13, %v1281_v25  ;;  %v1283_v29 = vpop.f32.mrb[3].mxu1  ;;  %v1702_v30 = vmax.f32 %v1638_v0, 0.0  ;;  %v1704_v32 = vmax.f32 %v1640_v18, 0.0 }
 0x17b   : > { %v1655_v28 = vadd.f32 %v3447_v13, %v1230_v26  ;;  %v1657_v31 = vadd.f32 %v3447_v13, %v1283_v29  ;;  %v1703_v33 = vmax.f32 %v1639_v19, 0.0  ;;  %v1705_v36 = vmax.f32 %v1641_v22, 0.0 }
 0x17c   : > { %v1718_v23 = vmax.f32 %v1654_v24, 0.0  ;;  %v1720_v34 = vmax.f32 %v1656_v27, 0.0  ;;  %v3477_v24 = vld [vmem:[%s3603_s5] sm:$0x1] }
 0x17d   : > { %v1719_v35 = vmax.f32 %v1655_v28, 0.0  ;;  %v1721_v38 = vmax.f32 %v1657_v31, 0.0 }
 0x17e   : > { %v2697_v37 = vpack.c.bf16 %v1718_v23, %v1702_v30  ;;  %v2705_v39 = vpack.c.bf16 %v1720_v34, %v1704_v32 }
 0x17f   : > { %v2695_v40 = vpack.c.bf16 %v1719_v35, %v1703_v33  ;;  %v1234_v41 = vpop.f32.mrb[4].mxu0  ;;  %v2703_v43 = vpack.c.bf16 %v1721_v38, %v1705_v36  ;;  %v1287_v45 = vpop.f32.mrb[4].mxu1 }
 0x180   : > { %v1670_v44 = vadd.f32 %v3449_v15, %v1234_v41  ;;  %v1236_v46 = vpop.f32.mrb[5].mxu0  ;;  %v1672_v47 = vadd.f32 %v3449_v15, %v1287_v45  ;;  %v1289_v49 = vpop.f32.mrb[5].mxu1 }
 0x181   : > { %v1671_v48 = vadd.f32 %v3449_v15, %v1236_v46  ;;  %v1238_v50 = vpop.f32.mrb[6].mxu0  ;;  %2696 = vmatprep.subr.bf16.mxu0 %v2695_v40  ;;  %v1673_v51 = vadd.f32 %v3449_v15, %v1289_v49  ;;  %v1291_v53 = vpop.f32.mrb[6].mxu1  ;;  %2704 = vmatprep.subr.bf16.mxu1 %v2703_v43 }
 0x182   : > { %v1686_v52 = vadd.f32 %v3459_v42, %v1238_v50  ;;  %v1240_v54 = vpop.f32.mrb[7].mxu0  ;;  %2698 = vmatpush1.bf16.msra.mxu0 %v2697_v37  ;;  %v1688_v55 = vadd.f32 %v3459_v42, %v1291_v53  ;;  %v1293_v57 = vpop.f32.mrb[7].mxu1  ;;  %2706 = vmatpush1.bf16.msra.mxu1 %v2705_v39  ;;  %v1734_v58 = vmax.f32 %v1670_v44, 0.0  ;;  %v1736_v61 = vmax.f32 %v1672_v47, 0.0 }
 0x183   : > { %v1687_v56 = vadd.f32 %v3459_v42, %v1240_v54  ;;  %v1689_v60 = vadd.f32 %v3459_v42, %v1293_v57  ;;  %v1735_v62 = vmax.f32 %v1671_v48, 0.0  ;;  %v1737_v2 = vmax.f32 %v1673_v51, 0.0 }
 0x184   : > { %v1750_v59 = vmax.f32 %v1686_v52, 0.0  ;;  %v1752_v63 = vmax.f32 %v1688_v55, 0.0 }
 0x185   : > { %v1751_v1 = vmax.f32 %v1687_v56, 0.0  ;;  %v1753_v4 = vmax.f32 %v1689_v60, 0.0 }
 0x186   : > { %v2701_v3 = vpack.c.bf16 %v1750_v59, %v1734_v58  ;;  %v2709_v5 = vpack.c.bf16 %v1752_v63, %v1736_v61 }
 0x187   : > { %v2699_v6 = vpack.c.bf16 %v1751_v1, %v1735_v62  ;;  %v1330_v7 = vpop.f32.mrb[8].mxu0  ;;  %v2707_v8 = vpack.c.bf16 %v1753_v4, %v1737_v2  ;;  %v1383_v10 = vpop.f32.mrb[8].mxu1 }
 0x188   : > { %v1642_v9 = vadd.f32 %v3445_v12, %v1330_v7  ;;  %v1332_v14 = vpop.f32.mrb[9].mxu0  ;;  %v1644_v0 = vadd.f32 %v3445_v12, %v1383_v10  ;;  %v1385_v17 = vpop.f32.mrb[9].mxu1 }
 0x189   : > { %v1643_v16 = vadd.f32 %v3445_v12, %v1332_v14  ;;  %v1334_v18 = vpop.f32.mrb[10].mxu0  ;;  %2700 = vmatprep.subr.bf16.mxu0 %v2699_v6  ;;  %v1645_v19 = vadd.f32 %v3445_v12, %v1385_v17  ;;  %v1387_v21 = vpop.f32.mrb[10].mxu1  ;;  %2708 = vmatprep.subr.bf16.mxu1 %v2707_v8 }
 0x18a   : > { %v1658_v20 = vadd.f32 %v3447_v13, %v1334_v18  ;;  %v1336_v22 = vpop.f32.mrb[11].mxu0  ;;  %2702 = vmatpush1.bf16.msra.mxu0 %v2701_v3  ;;  %v1660_v25 = vadd.f32 %v3447_v13, %v1387_v21  ;;  %v1389_v27 = vpop.f32.mrb[11].mxu1  ;;  %2710 = vmatpush1.bf16.msra.mxu1 %v2709_v5  ;;  %v1706_v28 = vmax.f32 %v1642_v9, 0.0  ;;  %v1708_v23 = vmax.f32 %v1644_v0, 0.0 }
 0x18b   : > { %v1659_v26 = vadd.f32 %v3447_v13, %v1336_v22  ;;  %v1661_v30 = vadd.f32 %v3447_v13, %v1389_v27  ;;  %v1707_v31 = vmax.f32 %v1643_v16, 0.0  ;;  %v1709_v34 = vmax.f32 %v1645_v19, 0.0 }
 0x18c   : > { %v1722_v29 = vmax.f32 %v1658_v20, 0.0  ;;  %v1724_v32 = vmax.f32 %v1660_v25, 0.0 }
 0x18d   : > { %v1723_v33 = vmax.f32 %v1659_v26, 0.0  ;;  %2679 = vmatmul.mubr.msk.f32.vlgmr.msra.gmra.mrb[32].mxu0 %vm583_vm0, %v3477_v24  ;;  %v1725_v36 = vmax.f32 %v1661_v30, 0.0  ;;  %2680 = vmatmul.mubr.msk.f32.vlgmr.msra.gmra.mrb[32].mxu1 %vm583_vm0, %v3477_v24 }
 0x18e   : > { %v2713_v35 = vpack.c.bf16 %v1722_v29, %v1706_v28  ;;  %1978 = vmatprep.mubr.f32.mxu0 %v3024_v11  ;;  %v2721_v37 = vpack.c.bf16 %v1724_v32, %v1708_v23  ;;  %2049 = vmatprep.mubr.f32.mxu1 %v3024_v11 }
 0x18f   : > { %v2711_v38 = vpack.c.bf16 %v1723_v33, %v1707_v31  ;;  %v1340_v39 = vpop.f32.mrb[12].mxu0  ;;  %v2719_v40 = vpack.c.bf16 %v1725_v36, %v1709_v34  ;;  %v1393_v43 = vpop.f32.mrb[12].mxu1 }
 0x190   : > { %v1674_v41 = vadd.f32 %v3449_v15, %v1340_v39  ;;  %v1342_v44 = vpop.f32.mrb[13].mxu0  ;;  %v1676_v45 = vadd.f32 %v3449_v15, %v1393_v43  ;;  %v1395_v47 = vpop.f32.mrb[13].mxu1 }
 0x191   : > { %v1675_v46 = vadd.f32 %v3449_v15, %v1342_v44  ;;  %v1344_v48 = vpop.f32.mrb[14].mxu0  ;;  %2712 = vmatprep.subr.bf16.mxu0 %v2711_v38  ;;  %v1677_v49 = vadd.f32 %v3449_v15, %v1395_v47  ;;  %v1397_v51 = vpop.f32.mrb[14].mxu1  ;;  %2720 = vmatprep.subr.bf16.mxu1 %v2719_v40 }
 0x192   : > { %v1690_v50 = vadd.f32 %v3459_v42, %v1344_v48  ;;  %v1346_v52 = vpop.f32.mrb[15].mxu0  ;;  %2714 = vmatpush1.bf16.msra.mxu0 %v2713_v35  ;;  %v1692_v53 = vadd.f32 %v3459_v42, %v1397_v51  ;;  %v1399_v55 = vpop.f32.mrb[15].mxu1  ;;  %2722 = vmatpush1.bf16.msra.mxu1 %v2721_v37  ;;  %v1738_v56 = vmax.f32 %v1674_v41, 0.0  ;;  %v1740_v59 = vmax.f32 %v1676_v45, 0.0 }
 0x193   : > { %v1691_v54 = vadd.f32 %v3459_v42, %v1346_v52  ;;  %v1693_v58 = vadd.f32 %v3459_v42, %v1399_v55  ;;  %v1739_v60 = vmax.f32 %v1675_v46, 0.0  ;;  %v1741_v63 = vmax.f32 %v1677_v49, 0.0 }
 0x194   : > { %v1754_v57 = vmax.f32 %v1690_v50, 0.0  ;;  %v1756_v61 = vmax.f32 %v1692_v53, 0.0 }
 0x195   : > { %v1755_v62 = vmax.f32 %v1691_v54, 0.0  ;;  %v1757_v2 = vmax.f32 %v1693_v58, 0.0 }
 0x196   : > { %v2717_v1 = vpack.c.bf16 %v1754_v57, %v1738_v56  ;;  %v2725_v3 = vpack.c.bf16 %v1756_v61, %v1740_v59 }
 0x197   : > { %v2715_v4 = vpack.c.bf16 %v1755_v62, %v1739_v60  ;;  %v1436_v5 = vpop.f32.mrb[16].mxu0  ;;  %v2723_v6 = vpack.c.bf16 %v1757_v2, %v1741_v63  ;;  %v1489_v8 = vpop.f32.mrb[16].mxu1 }
 0x198   : > { %v1646_v7 = vadd.f32 %v3445_v12, %v1436_v5  ;;  %v1438_v9 = vpop.f32.mrb[17].mxu0  ;;  %v1648_v10 = vadd.f32 %v3445_v12, %v1489_v8  ;;  %v1491_v0 = vpop.f32.mrb[17].mxu1 }
 0x199   : > { %v1647_v14 = vadd.f32 %v3445_v12, %v1438_v9  ;;  %v1440_v16 = vpop.f32.mrb[18].mxu0  ;;  %2716 = vmatprep.subr.bf16.mxu0 %v2715_v4  ;;  %v1649_v17 = vadd.f32 %v3445_v12, %v1491_v0  ;;  %v1493_v19 = vpop.f32.mrb[18].mxu1  ;;  %2724 = vmatprep.subr.bf16.mxu1 %v2723_v6 }
 0x19a   : > { %v1662_v18 = vadd.f32 %v3447_v13, %v1440_v16  ;;  %v1442_v20 = vpop.f32.mrb[19].mxu0  ;;  %2718 = vmatpush1.bf16.msra.mxu0 %v2717_v1  ;;  %v1664_v21 = vadd.f32 %v3447_v13, %v1493_v19  ;;  %v1495_v25 = vpop.f32.mrb[19].mxu1  ;;  %2726 = vmatpush1.bf16.msra.mxu1 %v2725_v3  ;;  %v1710_v26 = vmax.f32 %v1646_v7, 0.0  ;;  %v1712_v29 = vmax.f32 %v1648_v10, 0.0 }
 0x19b   : > { %v1663_v22 = vadd.f32 %v3447_v13, %v1442_v20  ;;  %v1665_v28 = vadd.f32 %v3447_v13, %v1495_v25  ;;  %v1711_v30 = vmax.f32 %v1647_v14, 0.0  ;;  %v1713_v32 = vmax.f32 %v1649_v17, 0.0 }
 0x19c   : > { %v1726_v27 = vmax.f32 %v1662_v18, 0.0  ;;  %v1728_v23 = vmax.f32 %v1664_v21, 0.0 }
 0x19d   : > { %v1727_v31 = vmax.f32 %v1663_v22, 0.0  ;;  %2681 = vmatmul.mubr.msk.f32.vlgmr.msra.gmra.mrb[34].mxu0 %vm583_vm0, %v3477_v24  ;;  %v1729_v34 = vmax.f32 %v1665_v28, 0.0  ;;  %2682 = vmatmul.mubr.msk.f32.vlgmr.msra.gmra.mrb[34].mxu1 %vm583_vm0, %v3477_v24 }
 0x19e   : > { %v2729_v33 = vpack.c.bf16 %v1726_v27, %v1710_v26  ;;  %2120 = vmatprep.mubr.f32.mxu0 %v3024_v11  ;;  %v2737_v35 = vpack.c.bf16 %v1728_v23, %v1712_v29  ;;  %2191 = vmatprep.mubr.f32.mxu1 %v3024_v11 }
 0x19f   : > { %v2727_v36 = vpack.c.bf16 %v1727_v31, %v1711_v30  ;;  %v1446_v37 = vpop.f32.mrb[20].mxu0  ;;  %v2735_v38 = vpack.c.bf16 %v1729_v34, %v1713_v32  ;;  %v1499_v40 = vpop.f32.mrb[20].mxu1 }
 0x1a0   : > { %v1678_v39 = vadd.f32 %v3449_v15, %v1446_v37  ;;  %v1448_v41 = vpop.f32.mrb[21].mxu0  ;;  %v1680_v43 = vadd.f32 %v3449_v15, %v1499_v40  ;;  %v1501_v45 = vpop.f32.mrb[21].mxu1 }
 0x1a1   : > { %v1679_v44 = vadd.f32 %v3449_v15, %v1448_v41  ;;  %v1450_v46 = vpop.f32.mrb[22].mxu0  ;;  %2728 = vmatprep.subr.bf16.mxu0 %v2727_v36  ;;  %v1681_v47 = vadd.f32 %v3449_v15, %v1501_v45  ;;  %v1503_v49 = vpop.f32.mrb[22].mxu1  ;;  %2736 = vmatprep.subr.bf16.mxu1 %v2735_v38 }
 0x1a2   : > { %v1694_v48 = vadd.f32 %v3459_v42, %v1450_v46  ;;  %v1452_v50 = vpop.f32.mrb[23].mxu0  ;;  %2730 = vmatpush1.bf16.msra.mxu0 %v2729_v33  ;;  %v1696_v51 = vadd.f32 %v3459_v42, %v1503_v49  ;;  %v1505_v53 = vpop.f32.mrb[23].mxu1  ;;  %2738 = vmatpush1.bf16.msra.mxu1 %v2737_v35  ;;  %v1742_v54 = vmax.f32 %v1678_v39, 0.0  ;;  %v1744_v57 = vmax.f32 %v1680_v43, 0.0 }
 0x1a3   : > { %v1695_v52 = vadd.f32 %v3459_v42, %v1452_v50  ;;  %v1697_v56 = vadd.f32 %v3459_v42, %v1505_v53  ;;  %v1743_v58 = vmax.f32 %v1679_v44, 0.0  ;;  %v1745_v61 = vmax.f32 %v1681_v47, 0.0 }
 0x1a4   : > { %v1758_v55 = vmax.f32 %v1694_v48, 0.0  ;;  %v1760_v59 = vmax.f32 %v1696_v51, 0.0 }
 0x1a5   : > { %v1759_v60 = vmax.f32 %v1695_v52, 0.0  ;;  %v1761_v63 = vmax.f32 %v1697_v56, 0.0 }
 0x1a6   : > { %v2733_v62 = vpack.c.bf16 %v1758_v55, %v1742_v54  ;;  %v2741_v1 = vpack.c.bf16 %v1760_v59, %v1744_v57 }
 0x1a7   : > { %v2731_v2 = vpack.c.bf16 %v1759_v60, %v1743_v58  ;;  %v1542_v3 = vpop.f32.mrb[24].mxu0  ;;  %v2739_v4 = vpack.c.bf16 %v1761_v63, %v1745_v61  ;;  %v1595_v6 = vpop.f32.mrb[24].mxu1  ;;  %v1768_v63 = vstv %s1767_s20 }
 0x1a8   : > { %v1650_v5 = vadd.f32 %v3445_v12, %v1542_v3  ;;  %v1544_v7 = vpop.f32.mrb[25].mxu0  ;;  %v1652_v8 = vadd.f32 %v3445_v12, %v1595_v6  ;;  %v1597_v10 = vpop.f32.mrb[25].mxu1 }
 0x1a9   : > { %v1651_v9 = vadd.f32 %v3445_v12, %v1544_v7  ;;  %v1546_v14 = vpop.f32.mrb[26].mxu0  ;;  %2732 = vmatprep.subr.bf16.mxu0 %v2731_v2  ;;  %v1653_v0 = vadd.f32 %v3445_v12, %v1597_v10  ;;  %v1599_v17 = vpop.f32.mrb[26].mxu1  ;;  %2740 = vmatprep.subr.bf16.mxu1 %v2739_v4 }
 0x1aa   : > { %v1666_v16 = vadd.f32 %v3447_v13, %v1546_v14  ;;  %v1548_v18 = vpop.f32.mrb[27].mxu0  ;;  %2734 = vmatpush1.bf16.msra.mxu0 %v2733_v62  ;;  %v1668_v19 = vadd.f32 %v3447_v13, %v1599_v17  ;;  %v1601_v21 = vpop.f32.mrb[27].mxu1  ;;  %2742 = vmatpush1.bf16.msra.mxu1 %v2741_v1  ;;  %v1714_v22 = vmax.f32 %v1650_v5, 0.0  ;;  %v1716_v27 = vmax.f32 %v1652_v8, 0.0 }
 0x1ab   : > { %v1667_v20 = vadd.f32 %v3447_v13, %v1548_v18  ;;  %v1669_v26 = vadd.f32 %v3447_v13, %v1601_v21  ;;  %v1715_v28 = vmax.f32 %v1651_v9, 0.0  ;;  %v1717_v30 = vmax.f32 %v1653_v0, 0.0 }
 0x1ac   : > { %v1730_v25 = vmax.f32 %v1666_v16, 0.0  ;;  %v1732_v29 = vmax.f32 %v1668_v19, 0.0  ;;  %v2363_v62 = vlaneseq }
 0x1ad   : > { %v1731_v12 = vmax.f32 %v1667_v20, 0.0  ;;  %2683 = vmatmul.mubr.msk.f32.vlgmr.msra.gmra.mrb[36].mxu0 %vm583_vm0, %v3477_v24  ;;  %v1733_v31 = vmax.f32 %v1669_v26, 0.0  ;;  %2684 = vmatmul.mubr.msk.f32.vlgmr.msra.gmra.mrb[36].mxu1 %vm583_vm0, %v3477_v24 }
 0x1ae   : > { %v2745_v23 = vpack.c.bf16 %v1730_v25, %v1714_v22  ;;  %2262 = vmatprep.mubr.f32.mxu0 %v3024_v11  ;;  %v2753_v32 = vpack.c.bf16 %v1732_v29, %v1716_v27  ;;  %2333 = vmatprep.mubr.f32.mxu1 %v3024_v11  ;;  %v2364_v2 = vshrl.u32 %v2363_v62, 7 }
 0x1af   : > { %v2743_v33 = vpack.c.bf16 %v1731_v12, %v1715_v28  ;;  %v1552_v34 = vpop.f32.mrb[28].mxu0  ;;  %v2751_v13 = vpack.c.bf16 %v1733_v31, %v1717_v30  ;;  %v1605_v36 = vpop.f32.mrb[28].mxu1 }
 0x1b0   : > { %v1682_v35 = vadd.f32 %v3449_v15, %v1552_v34  ;;  %v1554_v37 = vpop.f32.mrb[29].mxu0  ;;  %v1684_v38 = vadd.f32 %v3449_v15, %v1605_v36  ;;  %v1607_v40 = vpop.f32.mrb[29].mxu1 }
 0x1b1   : > { %v1683_v39 = vadd.f32 %v3449_v15, %v1554_v37  ;;  %v1556_v41 = vpop.f32.mrb[30].mxu0  ;;  %2744 = vmatprep.subr.bf16.mxu0 %v2743_v33  ;;  %v1685_v43 = vadd.f32 %v3449_v15, %v1607_v40  ;;  %v1609_v45 = vpop.f32.mrb[30].mxu1  ;;  %2752 = vmatprep.subr.bf16.mxu1 %v2751_v13 }
 0x1b2   : > { %v1698_v44 = vadd.f32 %v3459_v42, %v1556_v41  ;;  %v1558_v46 = vpop.f32.mrb[31].mxu0  ;;  %2746 = vmatpush1.bf16.msra.mxu0 %v2745_v23  ;;  %v1700_v11 = vadd.f32 %v3459_v42, %v1609_v45  ;;  %v1611_v48 = vpop.f32.mrb[31].mxu1  ;;  %2754 = vmatpush1.bf16.msra.mxu1 %v2753_v32  ;;  %v1746_v49 = vmax.f32 %v1682_v35, 0.0  ;;  %v1748_v52 = vmax.f32 %v1684_v38, 0.0 }
 0x1b3   : > { %v1699_v47 = vadd.f32 %v3459_v42, %v1558_v46  ;;  %v1701_v51 = vadd.f32 %v3459_v42, %v1611_v48  ;;  %v1747_v53 = vmax.f32 %v1683_v39, 0.0  ;;  %v1749_v55 = vmax.f32 %v1685_v43, 0.0 }
 0x1b4   : > { %v1762_v50 = vmax.f32 %v1698_v44, 0.0  ;;  %v1764_v54 = vmax.f32 %v1700_v11, 0.0  ;;  %v3025_v42 = vmov 1966171168  }
 0x1b5   : > { %v1763_v15 = vmax.f32 %v1699_v47, 0.0  ;;  %v1765_v57 = vmax.f32 %v1701_v51, 0.0  ;;  %v2361_v61 = vunpack.c.l.s4 %v3025_v42 }
 0x1b6   : > { %v2749_v56 = vpack.c.bf16 %v1762_v50, %v1746_v49  ;;  %v2757_v58 = vpack.c.bf16 %v1764_v54, %v1748_v52 }
 0x1b7   : > { %v2747_v59 = vpack.c.bf16 %v1763_v15, %v1747_v53  ;;  %v2755_v60 = vpack.c.bf16 %v1765_v57, %v1749_v55  ;;  %v2362_v1 = vunpack.c.0.s8 %v2361_v61 }
 0x1b9   : > { %2748 = vmatprep.subr.bf16.mxu0 %v2747_v59  ;;  %2756 = vmatprep.subr.bf16.mxu1 %v2755_v60  ;;  %v2365_v9 = vsub.s32 %v2362_v1, %v2364_v2 }
 0x1ba   : > { %2750 = vmatpush1.bf16.msra.mxu0 %v2749_v56  ;;  %2758 = vmatpush1.bf16.msra.mxu1 %v2757_v58 }
 0x1bd   : > { %2685 = vmatmul.mubr.msk.f32.vlgmr.msra.gmra.mrb[38].mxu0 %vm583_vm0, %v3477_v24  ;;  %2686 = vmatmul.mubr.msk.f32.vlgmr.msra.gmra.mrb[38].mxu1 %vm583_vm0, %v3477_v24 }
 0x260   : > { %v1838_v3 = vpop.f32.mrb[32].mxu0  ;;  %v1909_v5 = vpop.f32.mrb[32].mxu1 }
 0x261   : > { %v1839_v4 = vadd.f32 %v1838_v3, %v1768_v63  ;;  %v1840_v6 = vpop.f32.mrb[33].mxu0  ;;  %v1910_v7 = vadd.f32 %v1909_v5, %v1768_v63  ;;  %v1911_v10 = vpop.f32.mrb[33].mxu1 }
 0x262   : > { %v1841_v8 = vadd.f32 %v1840_v6, %v1768_v63  ;;  %v1912_v14 = vadd.f32 %v1911_v10, %v1768_v63 }
 0x264   : > { %v2356_v0 = vcombine.low %v1839_v4, %v1841_v8  ;;  %v2357_v16 = vcombine.low %v1910_v7, %v1912_v14 }
 0x266   : > { %v2366_v17 = vrot.slane %v2356_v0, %v2365_v9  ;;  %v2373_v24 = vrot.slane %v2357_v16, %v2365_v9 }
 0x268   : > { %v2388_v18 = vcombine.low %v2366_v17, %v2373_v24 }
 0x26a   : > { %v2396_v31 = vrot.slane %v2388_v18, %v2365_v9 }
 0x270   : > { %v1980_v19 = vpop.f32.mrb[34].mxu0  ;;  %v2051_v21 = vpop.f32.mrb[34].mxu1 }
 0x271   : > { %v1981_v20 = vadd.f32 %v1980_v19, %v1768_v63  ;;  %v1982_v22 = vpop.f32.mrb[35].mxu0  ;;  %v2052_v25 = vadd.f32 %v2051_v21, %v1768_v63  ;;  %v2053_v27 = vpop.f32.mrb[35].mxu1 }
 0x272   : > { %v1983_v26 = vadd.f32 %v1982_v22, %v1768_v63  ;;  %v2054_v28 = vadd.f32 %v2053_v27, %v1768_v63 }
 0x274   : > { %v2358_v29 = vcombine.low %v1981_v20, %v1983_v26  ;;  %v2359_v12 = vcombine.low %v2052_v25, %v2054_v28 }
 0x276   : > { %v2380_v30 = vrot.slane %v2358_v29, %v2365_v9  ;;  %v2387_v23 = vrot.slane %v2359_v12, %v2365_v9 }
 0x278   : > { %v2389_v32 = vcombine.low %v2380_v30, %v2387_v23 }
 0x27a   : > { %v2403_v33 = vrot.slane %v2389_v32, %v2365_v9 }
 0x27c   : > { %v2404_v34 = vcombine.low %v2396_v31, %v2403_v33 }
 0x27e   : > { %2456 = vst [vmem:[%s3545_s19] sm:$0xff] %v2404_v34 }
 0x280   : > { %v2122_v13 = vpop.f32.mrb[36].mxu0  ;;  %v2193_v36 = vpop.f32.mrb[36].mxu1 }
 0x281   : > { %v2123_v35 = vadd.f32 %v2122_v13, %v1768_v63  ;;  %v2124_v37 = vpop.f32.mrb[37].mxu0  ;;  %v2194_v38 = vadd.f32 %v2193_v36, %v1768_v63  ;;  %v2195_v40 = vpop.f32.mrb[37].mxu1 }
 0x282   : > { %v2125_v39 = vadd.f32 %v2124_v37, %v1768_v63  ;;  %v2196_v41 = vadd.f32 %v2195_v40, %v1768_v63 }
 0x284   : > { %v2405_v43 = vcombine.low %v2123_v35, %v2125_v39  ;;  %v2406_v44 = vcombine.low %v2194_v38, %v2196_v41 }
 0x286   : > { %v2415_v45 = vrot.slane %v2405_v43, %v2365_v9  ;;  %v2422_v46 = vrot.slane %v2406_v44, %v2365_v9 }
 0x288   : > { %v2437_v11 = vcombine.low %v2415_v45, %v2422_v46 }
 0x28a   : > { %v2445_v59 = vrot.slane %v2437_v11, %v2365_v9 }
 0x290   : > { %v2264_v47 = vpop.f32.mrb[38].mxu0  ;;  %v2335_v49 = vpop.f32.mrb[38].mxu1 }
 0x291   : > { %v2265_v48 = vadd.f32 %v2264_v47, %v1768_v63  ;;  %v2266_v50 = vpop.f32.mrb[39].mxu0  ;;  %v2336_v51 = vadd.f32 %v2335_v49, %v1768_v63  ;;  %v2337_v53 = vpop.f32.mrb[39].mxu1 }
 0x292   : > { %v2267_v52 = vadd.f32 %v2266_v50, %v1768_v63  ;;  %v2338_v54 = vadd.f32 %v2337_v53, %v1768_v63 }
 0x294   : > { %v2407_v15 = vcombine.low %v2265_v48, %v2267_v52  ;;  %v2408_v55 = vcombine.low %v2336_v51, %v2338_v54 }
 0x296   : > { %v2429_v56 = vrot.slane %v2407_v15, %v2365_v9  ;;  %v2436_v57 = vrot.slane %v2408_v55, %v2365_v9 }
 0x298   : > { %v2438_v58 = vcombine.low %v2429_v56, %v2436_v57 }
 0x29a   : > { %v2452_v60 = vrot.slane %v2438_v58, %v2365_v9 }
 0x29c   : > { %v2453_v42 = vcombine.low %v2445_v59, %v2452_v60 }
 0x29e   : > { %2457 = vst [vmem:[%s3545_s19 + $0x8] sm:$0xff] %v2453_v42 }
 0x29f   : > { %2959 = shalt.err (!%p2956_p11)
}
 0x2a0   : > { %s2960_s25 = scalar_lea.hbm %s3553_s30, 256  ;;  %s2964_s24 = scalar_lea.hbm %s3605_s7, 512 }
 0x2a1   : > { %p2961_p0 = scmp.ne.s32.totalorder %s3553_s30, %s2960_s25  ;;  %p2965_p3 = scmp.lt.u32.totalorder %s3553_s30, %s3605_s7 }
 0x2a2   : > { %p2966_p5 = scmp.lt.u32.totalorder %s2964_s24, %s2960_s25  ;;  %p2968_p13 = scmp.lt.u32.totalorder %s2960_s25, %s3553_s30 }
 0x2a3   : > { %p2962_p4 = pnand %p2961_p0, %p3621_p2 }
 0x2a4   : > { %p2967_p6 = por %p2966_p5, %p2965_p3 }
 0x2a5   : > { %p2963_p1 = pneg %p2962_p4 }
 0x2a6   : > { %p2969_p12 = por %p2968_p13, %p2967_p6 }
 0x2a8   : > { %p2970_p10 = pnand %p2969_p12, %p2963_p1 }
 0x2aa   : > { %2973 = shalt.err (!%p2970_p10)
}
 0x2ab   : > { %2827 = dma.vmem_to_hbm [thread:$0]  (%p3621_p2), %s3555_s0, 256, %s3553_s30, %s2459_s23  }
 0x2ac PF: > { %s2485_s10 = sand.u32 1, %s3004_s26   ;;  %p3622_p7 = scmp.ne.s32.totalorder %s3614_s15, 0 }
 0x2ad   : > { %p3623_p8 = scmp.ge.s32.totalorder %s3016_s29, 2  ;;  %s2486_s19 = scalar_lea.sflag [#allocation5], %s2485_s10 }
 0x2af   : > { %p2837_p9 = pnand %p3623_p8, %p3622_p7 }
 0x2b1   : > { %2999 = dma.done.wait (!%p2837_p9), %s2486_s19, 256  }
 0x2b2   : > { %3001 = vsyncadd (!%p2837_p9), %s2486_s19, 4294967040  ;;  %s3624_s21 = sld [smem:[#allocation12_spill]]  ;;  %p24_p11 = scmp.ge.s32.totalorder %s3095_s8, 4  }
 0x2b3   : > { %s3625_s26 = smov %s3008_s27  ;;  %s3626_s27 = smov %s3012_s28 }
 0x2b4   : > { %s3628_s29 = smov %s3095_s8  ;;  %26 = sbr.rel (!%p24_p11) target bundleno = 10 (0xa), region = 106 }
 0x2b8   : > { %s3627_s28 = smov %s3624_s21 }
 0x2bb   :  { %2491 = vsyncpa [#allocation4], 1 }
 0x2bc   :  { %2493 = vsyncpa [#allocation4 + $0x1], 1 }
 0x2bd   :  { %2494 = vsyncpa [#allocation7], 1 }
 0x2be   :  { %2496 = vsyncpa [#allocation7 + $0x1], 1 }
 0x2bf   :  { %2497 = vsyncpa [#allocation5], 1 }
 0x2c0   :  { %2499 = vsyncpa [#allocation5 + $0x1], 1 }

</bundles_post_ra>
